<compile_context>
chip_gen: v5e
topology: v5e:2x2
jax: 0.10.0
libtpu: 0.0.40
codegen_flags: <defaults>
</compile_context>

<pallas_src>
import math
import jax
import jax.numpy as jnp
from jax.experimental import pallas as pl
from jax.experimental.pallas import tpu as pltpu


# ---------------------------------------------------------------------------
# Tile / group selection helpers
# ---------------------------------------------------------------------------

def _pick_tile(dim, target, align):
    """Largest aligned divisor of `dim` that is <= target; falls back to the
    full axis so the TPU (8,128) block constraint is always satisfied."""
    if dim <= target:
        return dim
    t = (target // align) * align
    while t >= align:
        if dim % t == 0:
            return t
        t -= align
    return dim


def _pick_head_group(num_heads, tgt_len, head_dim, itemsize, sub_align,
                     budget_bytes=8 << 20):
    """Heads per attention grid step.  Budget covers the double-buffered
    input/output blocks, the (T,T) weights block, the in-VMEM head-major
    copies and the f32 softmax temporaries, so it stays inside the scoped
    VMEM defaults (16 MiB v5e / 32 MiB v6e+v7x) without an explicit limit."""
    s_len = tgt_len

    def cost(g):
        in_blk = 2 * 3 * g * tgt_len * head_dim * itemsize     # qkv block, dbl-buffered
        out_blk = 2 * g * tgt_len * head_dim * itemsize        # o block, dbl-buffered
        w_blk = 2 * tgt_len * s_len * 4                        # (T,T) weights block
        relayout = 4 * g * tgt_len * head_dim * itemsize       # head-major q/k/v + o copy
        temps = 3 * g * tgt_len * s_len * 4                    # s / e / p (f32)
        acc = g * tgt_len * head_dim * 4                       # f32 PV result
        return in_blk + out_blk + w_blk + relayout + temps + acc

    # Block constraint on the (g, head_dim) minor dims: g == H or g % sub_align == 0.
    valid = [g for g in range(1, num_heads + 1)
             if num_heads % g == 0 and (g == num_heads or g % sub_align == 0)]
    fitting = [g for g in valid if cost(g) <= budget_bytes]
    return max(fitting) if fitting else min(valid)


# ---------------------------------------------------------------------------
# Linear kernels
# ---------------------------------------------------------------------------

def _linear_kernel_single(x_ref, w_ref, b_ref, o_ref):
    # Full reduction in one shot: no k grid axis, no scratch, single store.
    o_ref[...] = (jnp.dot(x_ref[...], w_ref[...],
                          preferred_element_type=jnp.float32)
                  + b_ref[...]).astype(o_ref.dtype)


def _linear_kernel_acc(x_ref, w_ref, b_ref, o_ref, acc_ref):
    # k-split fallback.  f32 scratch kept because the output may be bf16.
    k = pl.program_id(2)

    @pl.when(k == 0)
    def _():
        acc_ref[...] = jnp.zeros_like(acc_ref)

    acc_ref[...] += jnp.dot(x_ref[...], w_ref[...],
                            preferred_element_type=jnp.float32)

    @pl.when(k == pl.num_programs(2) - 1)
    def _():
        o_ref[...] = (acc_ref[...] + b_ref[...]).astype(o_ref.dtype)


def pallas_linear(x, w_t, bias, *, out_dtype,
                  tm_target=512, tn_target=512):
    """x: (N, in); w_t: pre-transposed (in, out); bias: (out,) f32 -> (N, out)."""
    n, in_dim = x.shape
    out_dim = w_t.shape[1]

    sub = 16 if x.dtype == jnp.bfloat16 else 8
    tm = _pick_tile(n, tm_target, sub)
    tn = _pick_tile(out_dim, tn_target, 128)
    # Full-K tile when it fits the scoped VMEM defaults double-buffered.
    tk_cap = 2048 if x.dtype.itemsize == 2 else 1024
    tk = in_dim if in_dim <= tk_cap else _pick_tile(in_dim, tk_cap, 128)

    b2 = bias.reshape(1, out_dim).astype(jnp.float32)
    nk = in_dim // tk

    if nk == 1:
        return pl.pallas_call(
            _linear_kernel_single,
            out_shape=jax.ShapeDtypeStruct((n, out_dim), out_dtype),
            grid=(n // tm, out_dim // tn),
            in_specs=[
                pl.BlockSpec((tm, in_dim), lambda i, j: (i, 0)),
                pl.BlockSpec((in_dim, tn), lambda i, j: (0, j)),
                pl.BlockSpec((1, tn), lambda i, j: (0, j)),
            ],
            out_specs=pl.BlockSpec((tm, tn), lambda i, j: (i, j)),
            compiler_params=pltpu.CompilerParams(
                dimension_semantics=("parallel", "parallel")),
        )(x, w_t, b2)

    return pl.pallas_call(
        _linear_kernel_acc,
        out_shape=jax.ShapeDtypeStruct((n, out_dim), out_dtype),
        grid=(n // tm, out_dim // tn, nk),
        in_specs=[
            pl.BlockSpec((tm, tk), lambda i, j, k: (i, k)),
            pl.BlockSpec((tk, tn), lambda i, j, k: (k, j)),
            pl.BlockSpec((1, tn), lambda i, j, k: (0, j)),
        ],
        out_specs=pl.BlockSpec((tm, tn), lambda i, j, k: (i, j)),
        scratch_shapes=[pltpu.VMEM((tm, tn), jnp.float32)],
        compiler_params=pltpu.CompilerParams(
            dimension_semantics=("parallel", "parallel", "arbitrary")),
    )(x, w_t, b2)


# ---------------------------------------------------------------------------
# Attention kernel
# ---------------------------------------------------------------------------

def _make_attn_kernel(tgt_len, g, head_dim, inv_num_heads, need_weights):
    def kernel(qkv_ref, o_ref, *maybe_w):
        # Slice the Ref (partial loads only), then one small head-major
        # relayout in VMEM (XLU work hidden under the MXU).
        q = jnp.swapaxes(qkv_ref[0, :, 0, :, :], 0, 1)   # (G, T, hd)
        k = jnp.swapaxes(qkv_ref[0, :, 1, :, :], 0, 1)   # (G, S, hd)
        v = jnp.swapaxes(qkv_ref[0, :, 2, :, :], 0, 1)   # (G, S, hd)

        # scores: 1/sqrt(hd) is pre-folded into W_q; contract on the last axis.
        s = jnp.einsum("gtd,gsd->gts", q, k,
                       preferred_element_type=jnp.float32)        # (G,T,S) f32
        s = s - jnp.max(s, axis=-1, keepdims=True)
        e = jnp.exp(s)
        p = e * pl.reciprocal(jnp.sum(e, axis=-1, keepdims=True), approx=True)

        o = jnp.einsum("gts,gsd->gtd", p.astype(v.dtype), v,
                       preferred_element_type=jnp.float32)        # (G,T,hd) f32
        # Lane-dense store: (T, G*hd) block of the (B, T, E) output.
        o_ref[0] = (jnp.swapaxes(o, 0, 1)
                    .reshape(tgt_len, g * head_dim)
                    .astype(o_ref.dtype))

        if need_weights:
            # Fused head-averaged attention weights: accumulate over head
            # groups into the per-batch (T, T) block; divide by H at the end.
            w_ref = maybe_w[0]
            hg = pl.program_id(1)

            @pl.when(hg == 0)
            def _():
                w_ref[...] = jnp.zeros_like(w_ref)

            w_ref[0] += jnp.sum(p, axis=0)

            @pl.when(hg == pl.num_programs(1) - 1)
            def _():
                w_ref[0] = w_ref[0] * inv_num_heads

    return kernel


def pallas_attention(qkv, num_heads, head_dim, *, need_weights, out_dtype):
    """qkv: (B, T, 3, H, hd) in storage dtype.
    Returns (attn (B, T, E), attn_weights (B, T, T) or None)."""
    bsz, tgt_len = qkv.shape[0], qkv.shape[1]
    embed_dim = num_heads * head_dim

    sub = 16 if qkv.dtype == jnp.bfloat16 else 8
    g = _pick_head_group(num_heads, tgt_len, head_dim, qkv.dtype.itemsize, sub)
    grid = (bsz, num_heads // g)
    # TODO(synk): for very long sequences the (G,T,S) score block must become a
    # flash-style inner loop over key tiles; on v7x with need_weights=True the
    # head axis should be split into a parallel outer chunk with partial weight
    # sums reduced in XLA so both TensorCores are used.

    in_specs = [pl.BlockSpec((1, tgt_len, 3, g, head_dim),
                             lambda b, hg: (b, 0, 0, hg, 0))]
    o_spec = pl.BlockSpec((1, tgt_len, g * head_dim), lambda b, hg: (b, 0, hg))
    o_shape = jax.ShapeDtypeStruct((bsz, tgt_len, embed_dim), out_dtype)
    kernel = _make_attn_kernel(tgt_len, g, head_dim, 1.0 / num_heads,
                               need_weights)

    if need_weights:
        out, w = pl.pallas_call(
            kernel,
            out_shape=(o_shape,
                       jax.ShapeDtypeStruct((bsz, tgt_len, tgt_len),
                                            jnp.float32)),
            grid=grid,
            in_specs=in_specs,
            out_specs=(o_spec,
                       pl.BlockSpec((1, tgt_len, tgt_len),
                                    lambda b, hg: (b, 0, 0))),
            compiler_params=pltpu.CompilerParams(
                dimension_semantics=("parallel", "arbitrary")),
        )(qkv)
        return out, w

    out = pl.pallas_call(
        kernel,
        out_shape=o_shape,
        grid=grid,
        in_specs=in_specs,
        out_specs=o_spec,
        compiler_params=pltpu.CompilerParams(
            dimension_semantics=("parallel", "parallel")),
    )(qkv)
    return out, None


# ---------------------------------------------------------------------------
# MultiheadAttention forward (self-attention, eval mode)
# ---------------------------------------------------------------------------

def multihead_attention_forward(query, params, num_heads, *, need_weights=True):
    """query: (T, B, E) float32. params from prepare_params().
    Returns (attn (T,B,E) f32, attn_weights (B,T,T) f32 or None)."""
    # TODO(synk): attn_mask / key_padding_mask / incremental_state / dropout /
    # add_bias_kv / add_zero_attn paths of the original module are not
    # implemented (self-attention eval path only).
    tgt_len, bsz, embed_dim = query.shape
    head_dim = embed_dim // num_heads
    compute_dtype = params["in_proj_weight_t"].dtype

    # One small transpose BEFORE the 3x qkv expansion, cast to storage dtype.
    x = (query.transpose(1, 0, 2)
         .reshape(bsz * tgt_len, embed_dim)
         .astype(compute_dtype))                                   # (B*T, E)

    # in-projection (scaling pre-folded): (B*T, 3E) in storage dtype
    qkv = pallas_linear(x, params["in_proj_weight_t"], params["in_proj_bias"],
                        out_dtype=compute_dtype)
    qkv = qkv.reshape(bsz, tgt_len, 3, num_heads, head_dim)        # free reshape

    # fused scale/QK^T/softmax/PV (+ optional head-averaged weights), lane-dense
    attn_bte, attn_w = pallas_attention(qkv, num_heads, head_dim,
                                        need_weights=need_weights,
                                        out_dtype=compute_dtype)   # (B,T,E)

    # output projection straight from the lane-dense layout, f32 result
    out = pallas_linear(attn_bte.reshape(bsz * tgt_len, embed_dim),
                        params["out_proj_weight_t"], params["out_proj_bias"],
                        out_dtype=jnp.float32)
    out = out.reshape(bsz, tgt_len, embed_dim).transpose(1, 0, 2)  # (T,B,E)
    return out, attn_w


# ---------------------------------------------------------------------------
# Parameters
# ---------------------------------------------------------------------------

def init_params(key, embed_dim):
    k1, k2 = jax.random.split(key)

    def xavier_uniform(k, shape):
        fan_out, fan_in = shape
        bound = math.sqrt(6.0 / (fan_in + fan_out))
        return jax.random.uniform(k, shape, jnp.float32, -bound, bound)

    return {
        "in_proj_weight": xavier_uniform(k1, (3 * embed_dim, embed_dim)),
        "in_proj_bias": jnp.zeros((3 * embed_dim,), jnp.float32),
        "out_proj_weight": xavier_uniform(k2, (embed_dim, embed_dim)),
        "out_proj_bias": jnp.zeros((embed_dim,), jnp.float32),
    }


def prepare_params(raw, num_heads, compute_dtype=jnp.bfloat16):
    """One-time transform: fold 1/sqrt(head_dim) into the Q slice, transpose
    weights to (in, out) layout and cast them to the MXU compute dtype.
    Biases stay f32 (added to the f32 accumulator)."""
    embed_dim = raw["out_proj_weight"].shape[0]
    scaling = (embed_dim // num_heads) ** (-0.5)
    w_in = raw["in_proj_weight"].at[:embed_dim].multiply(scaling)
    b_in = raw["in_proj_bias"].at[:embed_dim].multiply(scaling)
    return {
        "in_proj_weight_t": jnp.asarray(w_in.T, compute_dtype),          # (E, 3E)
        "in_proj_bias": jnp.asarray(b_in, jnp.float32),
        "out_proj_weight_t": jnp.asarray(raw["out_proj_weight"].T, compute_dtype),  # (E, E)
        "out_proj_bias": jnp.asarray(raw["out_proj_bias"], jnp.float32),
    }


if __name__ == "__main__":
    tgt_len, bsz, embed_dim, num_heads = 8, 2, 32, 4

    key = jax.random.PRNGKey(0)
    kq, kp = jax.random.split(key)
    query = jax.random.normal(kq, (tgt_len, bsz, embed_dim), jnp.float32)
    raw_params = init_params(kp, embed_dim)

    # ---- pure-JAX f32 reference (uses the raw, un-folded parameters) ----
    x_flat = query.reshape(tgt_len * bsz, embed_dim)
    qkv_r = x_flat @ raw_params["in_proj_weight"].T + raw_params["in_proj_bias"]
    qkv_r = qkv_r.reshape(tgt_len, bsz, 3 * embed_dim)
    q_r, k_r, v_r = jnp.split(qkv_r, 3, axis=-1)
    hd = embed_dim // num_heads
    th = lambda x: x.reshape(tgt_len, bsz * num_heads, hd).transpose(1, 0, 2)
    qh, kh, vh = th(q_r) * hd ** (-0.5), th(k_r), th(v_r)
    s_r = jnp.einsum("btd,bsd->bts", qh, kh)
    p_r = jax.nn.softmax(s_r, axis=-1)
    o_r = jnp.einsum("bts,bsd->btd", p_r, vh)
    ref_attn = (o_r.transpose(1, 0, 2).reshape(tgt_len * bsz, embed_dim)
                @ raw_params["out_proj_weight"].T + raw_params["out_proj_bias"]
                ).reshape(tgt_len, bsz, embed_dim)
    ref_w = p_r.reshape(bsz, num_heads, tgt_len, tgt_len).sum(1) / num_heads

    # ---- 1) production mode: bf16 MXU operands & storage, f32 accumulation ----
    params_bf16 = prepare_params(raw_params, num_heads, jnp.bfloat16)
    fwd = jax.jit(lambda q, p: multihead_attention_forward(q, p, num_heads))
    attn, attn_weights = fwd(query, params_bf16)
    jax.block_until_ready((attn, attn_weights))
    assert attn.shape == (tgt_len, bsz, embed_dim)
    assert attn_weights.shape == (bsz, tgt_len, tgt_len)
    assert jnp.allclose(attn, ref_attn, atol=5e-2, rtol=5e-2)
    assert jnp.allclose(attn_weights, ref_w, atol=2e-2, rtol=2e-2)

    # ---- 2) f32 reference mode: tight numerical check of the kernel math ----
    params_f32 = prepare_params(raw_params, num_heads, jnp.float32)
    fwd32 = jax.jit(lambda q, p: multihead_attention_forward(q, p, num_heads))
    attn32, w32 = fwd32(query, params_f32)
    jax.block_until_ready((attn32, w32))
    assert jnp.allclose(attn32, ref_attn, atol=2e-3, rtol=2e-3)
    assert jnp.allclose(w32, ref_w, atol=1e-3, rtol=1e-3)

    # ---- 3) need_weights=False path (no (B,T,T) writeback, parallel heads) ----
    fwd_nw = jax.jit(lambda q, p: multihead_attention_forward(
        q, p, num_heads, need_weights=False))
    attn_nw, w_nw = fwd_nw(query, params_bf16)
    jax.block_until_ready(attn_nw)
    assert w_nw is None
    assert jnp.allclose(attn_nw, attn, atol=1e-5, rtol=1e-5)

    print("KERNEL_OK")
</pallas_src>

<mosaic_0001>
module attributes {stable_mosaic.version = 11 : i64} {
  func.func @_linear_kernel_single(%arg0: i32, %arg1: i32, %arg2: memref<16x32xbf16, #tpu.memory_space<vmem>>, %arg3: memref<32x96xbf16, #tpu.memory_space<vmem>>, %arg4: memref<1x96xf32, #tpu.memory_space<vmem>>, %arg5: memref<16x96xbf16, #tpu.memory_space<vmem>>) attributes {dimension_semantics = [#tpu.dimension_semantics<parallel>, #tpu.dimension_semantics<parallel>], iteration_bounds = array<i64: 1, 1>, scalar_prefetch = 0 : i64, scratch_operands = 0 : i64, tpu.core_type = #tpu.core_type<tc>, window_params = [{transform_indices = @transform_0, window_bounds = array<i64: 16, 32>}, {transform_indices = @transform_1, window_bounds = array<i64: 32, 96>}, {transform_indices = @transform_2, window_bounds = array<i64: 1, 96>}, {transform_indices = @transform_3, window_bounds = array<i64: 16, 96>}]} {
    %c0 = arith.constant 0 : index
    %c0_0 = arith.constant 0 : index
    %0 = vector.load %arg2[%c0, %c0_0] : memref<16x32xbf16, #tpu.memory_space<vmem>>, vector<16x32xbf16>
    %c0_1 = arith.constant 0 : index
    %c0_2 = arith.constant 0 : index
    %1 = vector.load %arg3[%c0_1, %c0_2] : memref<32x96xbf16, #tpu.memory_space<vmem>>, vector<32x96xbf16>
    %cst = arith.constant dense<0.000000e+00> : vector<16x96xf32>
    %2 = tpu.matmul %0, %1, %cst {dimension_numbers = #tpu.dot_dimension_numbers<[1], [0], [0], [1], [0, 0, 1, 1], [], []>} : vector<16x32xbf16>, vector<32x96xbf16>, vector<16x96xf32> -> vector<16x96xf32>
    %c0_3 = arith.constant 0 : index
    %c0_4 = arith.constant 0 : index
    %3 = vector.load %arg4[%c0_3, %c0_4] : memref<1x96xf32, #tpu.memory_space<vmem>>, vector<1x96xf32>
    %4 = vector.broadcast %3 : vector<1x96xf32> to vector<16x96xf32>
    %5 = arith.addf %2, %4 : vector<16x96xf32>
    %6 = arith.truncf %5 : vector<16x96xf32> to vector<16x96xbf16>
    %c0_5 = arith.constant 0 : index
    %c0_6 = arith.constant 0 : index
    %7 = vector.load %arg5[%c0_5, %c0_6] : memref<16x96xbf16, #tpu.memory_space<vmem>>, vector<16x96xbf16>
    tpu.vector_store %arg5[%c0_5, %c0_6], %6 {strides = array<i32>} : memref<16x96xbf16, #tpu.memory_space<vmem>>, vector<16x96xbf16>,
    return
  }
  func.func @transform_0(%arg0: i32, %arg1: i32) -> (i32, i32) {
    %c0_i32 = arith.constant 0 : i32
    %c0_i32_0 = arith.constant 0 : i32
    return %arg0, %c0_i32 : i32, i32
  }
  func.func @transform_1(%arg0: i32, %arg1: i32) -> (i32, i32) {
    %c0_i32 = arith.constant 0 : i32
    %c0_i32_0 = arith.constant 0 : i32
    return %c0_i32, %arg1 : i32, i32
  }
  func.func @transform_2(%arg0: i32, %arg1: i32) -> (i32, i32) {
    %c0_i32 = arith.constant 0 : i32
    %c0_i32_0 = arith.constant 0 : i32
    return %c0_i32, %arg1 : i32, i32
  }
  func.func @transform_3(%arg0: i32, %arg1: i32) -> (i32, i32) {
    %c0_i32 = arith.constant 0 : i32
    return %arg0, %arg1 : i32, i32
  }
}

module attributes {stable_mosaic.version = 11 : i64} {
  func.func @_linear_kernel_single(%arg0: i32, %arg1: i32, %arg2: memref<16x32xbf16, #tpu.memory_space<vmem>>, %arg3: memref<32x32xbf16, #tpu.memory_space<vmem>>, %arg4: memref<1x32xf32, #tpu.memory_space<vmem>>, %arg5: memref<16x32xf32, #tpu.memory_space<vmem>>) attributes {dimension_semantics = [#tpu.dimension_semantics<parallel>, #tpu.dimension_semantics<parallel>], iteration_bounds = array<i64: 1, 1>, scalar_prefetch = 0 : i64, scratch_operands = 0 : i64, tpu.core_type = #tpu.core_type<tc>, window_params = [{transform_indices = @transform_0, window_bounds = array<i64: 16, 32>}, {transform_indices = @transform_1, window_bounds = array<i64: 32, 32>}, {transform_indices = @transform_2, window_bounds = array<i64: 1, 32>}, {transform_indices = @transform_3, window_bounds = array<i64: 16, 32>}]} {
    %c0 = arith.constant 0 : index
    %c0_0 = arith.constant 0 : index
    %0 = vector.load %arg2[%c0, %c0_0] : memref<16x32xbf16, #tpu.memory_space<vmem>>, vector<16x32xbf16>
    %c0_1 = arith.constant 0 : index
    %c0_2 = arith.constant 0 : index
    %1 = vector.load %arg3[%c0_1, %c0_2] : memref<32x32xbf16, #tpu.memory_space<vmem>>, vector<32x32xbf16>
    %cst = arith.constant dense<0.000000e+00> : vector<16x32xf32>
    %2 = tpu.matmul %0, %1, %cst {dimension_numbers = #tpu.dot_dimension_numbers<[1], [0], [0], [1], [0, 0, 1, 1], [], []>} : vector<16x32xbf16>, vector<32x32xbf16>, vector<16x32xf32> -> vector<16x32xf32>
    %c0_3 = arith.constant 0 : index
    %c0_4 = arith.constant 0 : index
    %3 = vector.load %arg4[%c0_3, %c0_4] : memref<1x32xf32, #tpu.memory_space<vmem>>, vector<1x32xf32>
    %4 = vector.broadcast %3 : vector<1x32xf32> to vector<16x32xf32>
    %5 = arith.addf %2, %4 : vector<16x32xf32>
    %c0_5 = arith.constant 0 : index
    %c0_6 = arith.constant 0 : index
    %6 = vector.load %arg5[%c0_5, %c0_6] : memref<16x32xf32, #tpu.memory_space<vmem>>, vector<16x32xf32>
    tpu.vector_store %arg5[%c0_5, %c0_6], %5 {strides = array<i32>} : memref<16x32xf32, #tpu.memory_space<vmem>>, vector<16x32xf32>,
    return
  }
  func.func @transform_0(%arg0: i32, %arg1: i32) -> (i32, i32) {
    %c0_i32 = arith.constant 0 : i32
    %c0_i32_0 = arith.constant 0 : i32
    return %arg0, %c0_i32 : i32, i32
  }
  func.func @transform_1(%arg0: i32, %arg1: i32) -> (i32, i32) {
    %c0_i32 = arith.constant 0 : i32
    %c0_i32_0 = arith.constant 0 : i32
    return %c0_i32, %arg1 : i32, i32
  }
  func.func @transform_2(%arg0: i32, %arg1: i32) -> (i32, i32) {
    %c0_i32 = arith.constant 0 : i32
    %c0_i32_0 = arith.constant 0 : i32
    return %c0_i32, %arg1 : i32, i32
  }
  func.func @transform_3(%arg0: i32, %arg1: i32) -> (i32, i32) {
    %c0_i32 = arith.constant 0 : i32
    return %arg0, %arg1 : i32, i32
  }
}

module attributes {stable_mosaic.version = 11 : i64} {
  func.func @kernel(%arg0: i32, %arg1: i32, %arg2: memref<1x8x3x4x8xbf16, #tpu.memory_space<vmem>>, %arg3: memref<1x8x32xbf16, #tpu.memory_space<vmem>>, %arg4: memref<1x8x8xf32, #tpu.memory_space<vmem>>) attributes {dimension_semantics = [#tpu.dimension_semantics<parallel>, #tpu.dimension_semantics<arbitrary>], iteration_bounds = array<i64: 2, 1>, scalar_prefetch = 0 : i64, scratch_operands = 0 : i64, tpu.core_type = #tpu.core_type<tc>, window_params = [{transform_indices = @transform_0, window_bounds = array<i64: 1, 8, 3, 4, 8>}, {transform_indices = @transform_1, window_bounds = array<i64: 1, 8, 32>}, {transform_indices = @transform_2, window_bounds = array<i64: 1, 8, 8>}]} {
    %c0 = arith.constant 0 : index
    %c0_0 = arith.constant 0 : index
    %c0_1 = arith.constant 0 : index
    %c0_2 = arith.constant 0 : index
    %c0_3 = arith.constant 0 : index
    %0 = vector.load %arg2[%c0, %c0_0, %c0_1, %c0_2, %c0_3] : memref<1x8x3x4x8xbf16, #tpu.memory_space<vmem>>, vector<1x8x1x4x8xbf16>
    %1 = vector.shape_cast %0 : vector<1x8x1x4x8xbf16> to vector<8x4x8xbf16>
    %2 = tpu.transpose %1, [1, 0, 2] : vector<8x4x8xbf16> -> vector<4x8x8xbf16>
    %c0_4 = arith.constant 0 : index
    %c0_5 = arith.constant 0 : index
    %c1 = arith.constant 1 : index
    %c0_6 = arith.constant 0 : index
    %c0_7 = arith.constant 0 : index
    %3 = vector.load %arg2[%c0_4, %c0_5, %c1, %c0_6, %c0_7] : memref<1x8x3x4x8xbf16, #tpu.memory_space<vmem>>, vector<1x8x1x4x8xbf16>
    %4 = vector.shape_cast %3 : vector<1x8x1x4x8xbf16> to vector<8x4x8xbf16>
    %5 = tpu.transpose %4, [1, 0, 2] : vector<8x4x8xbf16> -> vector<4x8x8xbf16>
    %c0_8 = arith.constant 0 : index
    %c0_9 = arith.constant 0 : index
    %c2 = arith.constant 2 : index
    %c0_10 = arith.constant 0 : index
    %c0_11 = arith.constant 0 : index
    %6 = vector.load %arg2[%c0_8, %c0_9, %c2, %c0_10, %c0_11] : memref<1x8x3x4x8xbf16, #tpu.memory_space<vmem>>, vector<1x8x1x4x8xbf16>
    %7 = vector.shape_cast %6 : vector<1x8x1x4x8xbf16> to vector<8x4x8xbf16>
    %8 = tpu.transpose %7, [1, 0, 2] : vector<8x4x8xbf16> -> vector<4x8x8xbf16>
    "tpu.trace_start"() <{level = 10 : i32, message = "gtd,gsd->gts"}> : () -> ()
    %cst = arith.constant dense<0.000000e+00> : vector<4x8x8xf32>
    %9 = tpu.matmul %2, %5, %cst {dimension_numbers = #tpu.dot_dimension_numbers<[2], [2], [1], [1], [0, 0, 0, 1, 1, 1], [0], [0]>} : vector<4x8x8xbf16>, vector<4x8x8xbf16>, vector<4x8x8xf32> -> vector<4x8x8xf32>
    "tpu.trace_stop"() : () -> ()
    %cst_12 = arith.constant dense<0xFF800000> : vector<4x8xf32>
    %10 = vector.multi_reduction <maximumf>, %9, %cst_12 [2] : vector<4x8x8xf32> to vector<4x8xf32>
    %11 = vector.shape_cast %10 : vector<4x8xf32> to vector<4x8x1xf32>
    %12 = vector.broadcast %11 : vector<4x8x1xf32> to vector<4x8x8xf32>
    %13 = arith.subf %9, %12 : vector<4x8x8xf32>
    %14 = math.exp %13 : vector<4x8x8xf32>
    %cst_13 = arith.constant dense<0.000000e+00> : vector<4x8xf32>
    %15 = vector.multi_reduction <add>, %14, %cst_13 [2] : vector<4x8x8xf32> to vector<4x8xf32>
    %16 = vector.shape_cast %15 : vector<4x8xf32> to vector<4x8x1xf32>
    %17 = tpu.reciprocal %16 {approx = true} : vector<4x8x1xf32> -> vector<4x8x1xf32>
    %18 = vector.broadcast %17 : vector<4x8x1xf32> to vector<4x8x8xf32>
    %19 = arith.mulf %14, %18 : vector<4x8x8xf32>
    %20 = arith.truncf %19 : vector<4x8x8xf32> to vector<4x8x8xbf16>
    "tpu.trace_start"() <{level = 10 : i32, message = "gts,gsd->gtd"}> : () -> ()
    %cst_14 = arith.constant dense<0.000000e+00> : vector<4x8x8xf32>
    %21 = tpu.matmul %20, %8, %cst_14 {dimension_numbers = #tpu.dot_dimension_numbers<[2], [1], [1], [2], [0, 0, 0, 1, 1, 2], [0], [0]>} : vector<4x8x8xbf16>, vector<4x8x8xbf16>, vector<4x8x8xf32> -> vector<4x8x8xf32>
    "tpu.trace_stop"() : () -> ()
    %22 = tpu.transpose %21, [1, 0, 2] : vector<4x8x8xf32> -> vector<8x4x8xf32>
    %23 = vector.shape_cast %22 : vector<8x4x8xf32> to vector<8x32xf32>
    %24 = arith.truncf %23 : vector<8x32xf32> to vector<8x32xbf16>
    %c0_15 = arith.constant 0 : index
    %c0_16 = arith.constant 0 : index
    %c0_17 = arith.constant 0 : index
    %25 = vector.load %arg3[%c0_15, %c0_16, %c0_17] : memref<1x8x32xbf16, #tpu.memory_space<vmem>>, vector<1x8x32xbf16>
    %26 = vector.shape_cast %25 : vector<1x8x32xbf16> to vector<8x32xbf16>
    %27 = vector.shape_cast %24 : vector<8x32xbf16> to vector<1x8x32xbf16>
    tpu.vector_store %arg3[%c0_15, %c0_16, %c0_17], %27 {strides = array<i32>} : memref<1x8x32xbf16, #tpu.memory_space<vmem>>, vector<1x8x32xbf16>,
    %c0_i32 = arith.constant 0 : i32
    %28 = arith.cmpi eq, %arg1, %c0_i32 : i32
    %29 = arith.extui %28 : i1 to i32
    %c0_i32_18 = arith.constant 0 : i32
    %30 = arith.cmpi ne, %29, %c0_i32_18 : i32
    scf.if %30 {
      %cst_28 = arith.constant 0.000000e+00 : f32
      %41 = vector.broadcast %cst_28 : f32 to vector<1x8x8xf32>
      %c0_29 = arith.constant 0 : index
      %c0_30 = arith.constant 0 : index
      %c0_31 = arith.constant 0 : index
      %42 = vector.load %arg4[%c0_29, %c0_30, %c0_31] : memref<1x8x8xf32, #tpu.memory_space<vmem>>, vector<1x8x8xf32>
      tpu.vector_store %arg4[%c0_29, %c0_30, %c0_31], %41 {strides = array<i32>} : memref<1x8x8xf32, #tpu.memory_space<vmem>>, vector<1x8x8xf32>,
    } else {
    }
    %c0_19 = arith.constant 0 : index
    %c0_20 = arith.constant 0 : index
    %c0_21 = arith.constant 0 : index
    %31 = vector.load %arg4[%c0_19, %c0_20, %c0_21] : memref<1x8x8xf32, #tpu.memory_space<vmem>>, vector<1x8x8xf32>
    %32 = vector.shape_cast %31 : vector<1x8x8xf32> to vector<8x8xf32>
    %cst_22 = arith.constant dense<0.000000e+00> : vector<8x8xf32>
    %33 = vector.multi_reduction <add>, %19, %cst_22 [0] : vector<4x8x8xf32> to vector<8x8xf32>
    %34 = arith.addf %32, %33 : vector<8x8xf32>
    %c0_23 = arith.constant 0 : index
    %c0_24 = arith.constant 0 : index
    %c0_25 = arith.constant 0 : index
    %35 = vector.load %arg4[%c0_23, %c0_24, %c0_25] : memref<1x8x8xf32, #tpu.memory_space<vmem>>, vector<1x8x8xf32>
    %36 = vector.shape_cast %35 : vector<1x8x8xf32> to vector<8x8xf32>
    %37 = vector.shape_cast %34 : vector<8x8xf32> to vector<1x8x8xf32>
    tpu.vector_store %arg4[%c0_23, %c0_24, %c0_25], %37 {strides = array<i32>} : memref<1x8x8xf32, #tpu.memory_space<vmem>>, vector<1x8x8xf32>,
    %c0_i32_26 = arith.constant 0 : i32
    %38 = arith.cmpi eq, %arg1, %c0_i32_26 : i32
    %39 = arith.extui %38 : i1 to i32
    %c0_i32_27 = arith.constant 0 : i32
    %40 = arith.cmpi ne, %39, %c0_i32_27 : i32
    scf.if %40 {
      %c0_28 = arith.constant 0 : index
      %c0_29 = arith.constant 0 : index
      %c0_30 = arith.constant 0 : index
      %41 = vector.load %arg4[%c0_28, %c0_29, %c0_30] : memref<1x8x8xf32, #tpu.memory_space<vmem>>, vector<1x8x8xf32>
      %42 = vector.shape_cast %41 : vector<1x8x8xf32> to vector<8x8xf32>
      %cst_31 = arith.constant 2.500000e-01 : f32
      %43 = vector.broadcast %cst_31 : f32 to vector<8x8xf32>
      %44 = arith.mulf %42, %43 : vector<8x8xf32>
      %c0_32 = arith.constant 0 : index
      %c0_33 = arith.constant 0 : index
      %c0_34 = arith.constant 0 : index
      %45 = vector.load %arg4[%c0_32, %c0_33, %c0_34] : memref<1x8x8xf32, #tpu.memory_space<vmem>>, vector<1x8x8xf32>
      %46 = vector.shape_cast %45 : vector<1x8x8xf32> to vector<8x8xf32>
      %47 = vector.shape_cast %44 : vector<8x8xf32> to vector<1x8x8xf32>
      tpu.vector_store %arg4[%c0_32, %c0_33, %c0_34], %47 {strides = array<i32>} : memref<1x8x8xf32, #tpu.memory_space<vmem>>, vector<1x8x8xf32>,
    } else {
    }
    return
  }
  func.func @transform_0(%arg0: i32, %arg1: i32) -> (i32, i32, i32, i32, i32) {
    %c0_i32 = arith.constant 0 : i32
    %c0_i32_0 = arith.constant 0 : i32
    %c0_i32_1 = arith.constant 0 : i32
    %c0_i32_2 = arith.constant 0 : i32
    return %arg0, %c0_i32, %c0_i32_0, %arg1, %c0_i32_1 : i32, i32, i32, i32, i32
  }
  func.func @transform_1(%arg0: i32, %arg1: i32) -> (i32, i32, i32) {
    %c0_i32 = arith.constant 0 : i32
    %c0_i32_0 = arith.constant 0 : i32
    return %arg0, %c0_i32, %arg1 : i32, i32, i32
  }
  func.func @transform_2(%arg0: i32, %arg1: i32) -> (i32, i32, i32) {
    %c0_i32 = arith.constant 0 : i32
    %c0_i32_0 = arith.constant 0 : i32
    %c0_i32_1 = arith.constant 0 : i32
    return %arg0, %c0_i32, %c0_i32_0 : i32, i32, i32
  }
}

</mosaic_0001>

<bundles_post_ra>
// kernel: _lambda_.3
= control target key start
LH: loop header
LB: loop body
LE: loop exit
PB: predicated region body
PF: predicated region fallthrough
CT: control target
= control target key end

     0   :  { %vm42_vm0 = vcmask 261120   ;;  %vm62_vm1 = vcmask 781312   ;;  %s124_s1 = inlined_call_operand.vmem [shape: bf16[32,96], index: 1, kind: input, shape index: {}]   ;;  %s125_s2 = inlined_call_operand.vmem [shape: f32[1,96], index: 2, kind: input, shape index: {}]   ;;  %s126_s0 = inlined_call_operand.vmem [shape: bf16[16,32], index: 0, kind: input, shape index: {}]   ;;  %s127_s3 = inlined_call_operand.vmem [shape: bf16[16,96], index: 3, kind: output, shape index: {}]  }
   0x1   :  { %v84_v0 = vld [vmem:[%s124_s1 + $0x8] sm:$0xff]  ;;  %v83_v1 = vld [vmem:[%s124_s1] sm:$0xff] }
   0x2   :  { %52 = vmatpush.bf16.msra.mxu0 %v84_v0  ;;  %v82_v2 = vld [vmem:[%s126_s0] sm:$0xff] }
   0x3   :  { %v85_v3 = vld [vmem:[%s125_s2] ss:$0 sm:$0xff] }
   0x6   :  { %53 = vmatpush.bf16.msra.mxu0 %v83_v1 }
   0x9   :  { %81 = vmatmul.msk.bf16.vlgmr.msra.gmra.mxu0 %vm42_vm0, %v82_v2 }
  0x86   :  { %v55_v4 = vpop.f32.mrf.mxu0 }
  0x87   :  { %v56_v5 = vadd.f32 %v85_v3, %v55_v4 }
  0x89   :  { %v60_v6 = vpack.c.bf16 %v56_v5, %v56_v5 }
  0x8b   :  { %63 = vst.msk [vmem:[%s127_s3] sm:$0xf] %vm62_vm1, %v60_v6 }
  0x8e   :  { %v57_v7 = vpop.f32.mrf.mxu0 }
  0x8f   :  { %v58_v8 = vadd.f32 %v85_v3, %v57_v7 }
  0x91   :  { %v61_v9 = vpack.c.bf16 %v58_v8, %v58_v8 }
  0x93   :  { %64 = vst.msk [vmem:[%s127_s3 + $0x4] sm:$0xf] %vm62_vm1, %v61_v9 }

// kernel: _lambda_.5
= control target key start
LH: loop header
LB: loop body
LE: loop exit
PB: predicated region body
PF: predicated region fallthrough
CT: control target
= control target key end

     0   :  { %vm42_vm0 = vcmask 261120   ;;  %s121_s1 = inlined_call_operand.vmem [shape: bf16[32,32], index: 1, kind: input, shape index: {}]   ;;  %s122_s2 = inlined_call_operand.vmem [shape: f32[1,32], index: 2, kind: input, shape index: {}]   ;;  %s123_s0 = inlined_call_operand.vmem [shape: bf16[16,32], index: 0, kind: input, shape index: {}]   ;;  %s124_s3 = inlined_call_operand.vmem [shape: f32[16,32], index: 3, kind: output, shape index: {}]  }
   0x1   :  { %v81_v0 = vld [vmem:[%s121_s1 + $0x8] sm:$0xff]  ;;  %v80_v1 = vld [vmem:[%s121_s1] sm:$0xff] }
   0x2   :  { %52 = vmatpush.bf16.msra.mxu0 %v81_v0  ;;  %v79_v2 = vld [vmem:[%s123_s0] sm:$0xff] }
   0x3   :  { %v82_v3 = vld [vmem:[%s122_s2] ss:$0 sm:$0xff] }
   0x6   :  { %53 = vmatpush.bf16.msra.mxu0 %v80_v1 }
   0x9   :  { %78 = vmatmul.msk.bf16.vlgmr.msra.gmra.mxu0 %vm42_vm0, %v79_v2 }
  0x86   :  { %v55_v4 = vpop.f32.mrf.mxu0 }
  0x87   :  { %v56_v5 = vadd.f32 %v82_v3, %v55_v4 }
  0x89   :  { %60 = vst.msk [vmem:[%s124_s3] sm:$0xff] %vm42_vm0, %v56_v5 }
  0x8e   :  { %v57_v6 = vpop.f32.mrf.mxu0 }
  0x8f   :  { %v58_v7 = vadd.f32 %v82_v3, %v57_v6 }
  0x91   :  { %61 = vst.msk [vmem:[%s124_s3 + $0x8] sm:$0xff] %vm42_vm0, %v58_v7 }

// kernel: _lambda_.4
= control target key start
LH: loop header
LB: loop body
LE: loop exit
PB: predicated region body
PF: predicated region fallthrough
CT: control target
= control target key end

     0   :  { %8 = vsyncpa [#allocation3], 0  ;;  %s1399_s0 = inlined_call_operand.vmem [shape: bf16[2,8,3,4,8], index: 0, kind: input, shape index: {}]   ;;  %s1400_s1 = inlined_call_operand.vmem [shape: bf16[2,8,32], index: 1, kind: output, shape index: {0}]   ;;  %s1401_s2 = inlined_call_operand.hbm [shape: f32[2,8,8], index: 2, kind: output, shape index: {1}]  }
   0x1   :  { %10 = vsyncpa [#allocation3 + $0x1], 0  ;;  %s1139_s9 = smov 0   ;;  %s1141_s10 = smov 0  }
   0x2   :  { %s1143_s11 = smov 0   ;;  %s1145_s12 = smov 0  }
   0x3   :  { %s1147_s13 = smov 0   ;;  %s1149_s14 = smov 0  }
   0x4 LB: > { %s924_s15 = sadd.s32 4294967295, %s1116_s14   ;;  %s925_s16 = sadd.s32 4294967294, %s1116_s14   ;;  %s1116_s14 = sphi %s1149_s14, %s16_s14   ;;  %s1112_s13 = sphi %s1147_s13, %s1408_s13   ;;  %s1108_s12 = sphi %s1145_s12, %s1407_s12   ;;  %s1104_s11 = sphi %s1143_s11, %s1406_s11   ;;  %s1100_s10 = sphi %s1141_s10, %s1405_s10   ;;  %s1096_s9 = sphi %s1139_s9, %s1404_s9  }
   0x5   : > { %s28_s17 = sadd.s32 1, %s1112_s13  ;;  %s91_s18 = sadd.s32 1, %s1104_s11 }
   0x6   : > { %p30_p0 = scmp.ge.s32.totalorder %s28_s17, 2  ;;  %p101_p1 = scmp.ne.s32.totalorder %s1104_s11, %s1100_s10 }
   0x7   : > { %p102_p2 = scmp.eq.s32.totalorder %s924_s15, 1  ;;  %p107_p3 = scmp.ne.s32.totalorder %s1100_s10, %s1096_s9 }
   0x8   : > { %s1410_s17 = smov (%p30_p0, %s28_s17), 0  ;;  %p108_p5 = scmp.eq.s32.totalorder %s925_s16, 1 }
   0x9   : > { %p1179_p4 = por %p102_p2, %p101_p1  ;;  %s88_s20 = ssub.s32 %s1112_s13, %s1410_s17 }
   0xa   : > { %p928_p6 = scmp.ge.s32.totalorder %s1116_s14, 1  ;;  %p89_p7 = scmp.eq.s32.totalorder %s88_s20, 0 }
   0xb   : > { %p1186_p8 = por %p108_p5, %p107_p3  ;;  %p137_p9 = scmp.lt.s32.totalorder %s1116_s14, 3 }
   0xc   : > { %s1192_s22 = scalar_select %p89_p7, %s1104_s11, %s91_s18  }
   0xd   : > { %p138_p10 = pnand %p928_p6, %p137_p9 }
   0xe   : > { %p169_p11 = scmp.lt.s32.totalorder (!%p138_p10), %s1108_s12, 1  ;;  %s166_s28 = sand.u32 (!%p138_p10), 1, %s1100_s10  }
   0xf   : > { %141 = sbr.rel (%p138_p10) target bundleno = 775 (0x307), region = 24  ;;  %s929_s29 = sshll.u32 (!%p138_p10), %s166_s28, 3 }
  0x10   : > { %s1305_s30 = scalar_lea.vmem (!%p138_p10), [#allocation2], %s929_s29  ;;  %s957_s3 = sshll.u32 (!%p138_p10), %s1108_s12, 3 }
  0x11   : > { %s815_s6 = scalar_lea.hbm (!%p138_p10), %s1401_s2, %s957_s3  ;;  %s817_s7 = sshll.u32 (!%p138_p10), %s1305_s30, 4  ;;  %s818_s7 = int_to_ptr.vmem [resolvable:$true] %s817_s7 }
  0x12   : > { %s819_s8 = sshll.u32 (!%p138_p10), %s815_s6, 4  ;;  %s820_s8 = int_to_ptr.hbm [resolvable:$true] %s819_s8 }
  0x13   : > { %s1052_s15 = sshra.s32 (!%p138_p10), %s820_s8, 4  ;;  %s1053_s15 = int_to_ptr.hbm [resolvable:$true] %s1052_s15 }
  0x14   : > { %s1196_s23 = scalar_select %p169_p11, %s1108_s12, 1  ;;  %v1118_v0 = vmov 1934713408   ;;  %vm194_vm0 = vcmask 1047556   ;;  %vm392_vm1 = vcmask 64512   ;;  %vm554_vm2 = vcmask 1043456  }
  0x15   : > { %v197_v1 = vunpack.c.l.s4 %v1118_v0  ;;  %s802_s12 = scalar_lea.sflag [#allocation3], %s166_s28  ;;  %s1054_s16 = scalar_lea.hbm %s1053_s15, 8 }
  0x16   : > { %s960_s24 = smul.u32 48, %s1196_s23  ;;  %p1055_p12 = scmp.ne.s32.totalorder %s1053_s15, %s1054_s16 }
  0x17   : > { %v1210_v8 = vunpack.c.0.s8 %v197_v1  ;;  %p1059_p1 = scmp.lt.s32.totalorder %s1053_s15, %s1401_s2 }
  0x18   : > { %s1202_s27 = scalar_lea.vmem %s1399_s0, %s960_s24  ;;  %p1056_p13 = pnand %p1055_p12, %p1179_p4 }
  0x19   : > { %v185_v2 = vld [vmem:[%s1202_s27] sm:$0x3]  ;;  %v186_v3 = vld [vmem:[%s1202_s27 + $0x6] sm:$0x3]  ;;  %v187_v4 = vld [vmem:[%s1202_s27 + $0xc] sm:$0x3] }
  0x1a   : > { %v188_v5 = vld [vmem:[%s1202_s27 + $0x12] sm:$0x3]  ;;  %v189_v6 = vld [vmem:[%s1202_s27 + $0x18] sm:$0x3]  ;;  %v190_v7 = vld [vmem:[%s1202_s27 + $0x1e] sm:$0x3]  ;;  %p1057_p0 = pneg %p1056_p13 }
  0x1b   : > { %v191_v9 = vld [vmem:[%s1202_s27 + $0x24] sm:$0x3]  ;;  %v192_v10 = vld [vmem:[%s1202_s27 + $0x2a] sm:$0x3]  ;;  %v193_v11 = vrot.slane %v187_v4, 4  ;;  %v202_v12 = vrot.slane %v188_v5, 4 }
  0x1c   : > { %v210_v13 = vrot.slane %v191_v9, 4  ;;  %v218_v14 = vrot.slane %v192_v10, 4  ;;  %v932_v17 = vld [vmem:[%s1202_s27 + $0x2] sm:$0x3]  ;;  %v934_v18 = vld [vmem:[%s1202_s27 + $0xe] sm:$0x3] }
  0x1d   : > { %v195_v15 = vsel %vm194_vm0, %v193_v11, %v185_v2  ;;  %v203_v16 = vsel %vm194_vm0, %v202_v12, %v186_v3  ;;  %v935_v19 = vld [vmem:[%s1202_s27 + $0x14] sm:$0x3]  ;;  %v933_v24 = vld [vmem:[%s1202_s27 + $0x8] sm:$0x3]  ;;  %v938_v25 = vld [vmem:[%s1202_s27 + $0x26] sm:$0x3] }
  0x1e   : > { %v199_v20 = vperm.slane %v195_v15, %v1210_v8  ;;  %v207_v21 = vperm.slane %v203_v16, %v1210_v8  ;;  %v211_v22 = vsel %vm194_vm0, %v210_v13, %v189_v6  ;;  %v219_v23 = vsel %vm194_vm0, %v218_v14, %v190_v7  ;;  %v939_v26 = vld [vmem:[%s1202_s27 + $0x2c] sm:$0x3]  ;;  %v936_v29 = vld [vmem:[%s1202_s27 + $0x1a] sm:$0x3]  ;;  %v937_v30 = vld [vmem:[%s1202_s27 + $0x20] sm:$0x3] }
  0x1f   : > { %v215_v27 = vperm.slane %v211_v22, %v1210_v8  ;;  %v223_v28 = vperm.slane %v219_v23, %v1210_v8  ;;  %v259_v31 = vrot.slane %v934_v18, 4  ;;  %v267_v32 = vrot.slane %v935_v19, 4  ;;  %s1058_s24 = scalar_lea.hbm %s1401_s2, 16 }
  0x20   : > { %v228_v33 = vpack.i.b16 %v207_v21, %v199_v20  ;;  %v275_v34 = vrot.slane %v938_v25, 4  ;;  %v283_v35 = vrot.slane %v939_v26, 4  ;;  %v229_v48 = vshrl.u32 %v199_v20, 16  ;;  %p1060_p2 = scmp.lt.s32.totalorder %s1058_s24, %s1054_s16 }
  0x21   : > { %v240_v36 = vpack.i.b16 %v223_v28, %v215_v27  ;;  %v260_v37 = vsel %vm194_vm0, %v259_v31, %v932_v17  ;;  %v268_v38 = vsel %vm194_vm0, %v267_v32, %v933_v24  ;;  %v230_v49 = vshrl.u32 %v207_v21, 16 }
  0x22   : > { %v276_v39 = vsel %vm194_vm0, %v275_v34, %v936_v29  ;;  %v284_v40 = vsel %vm194_vm0, %v283_v35, %v937_v30  ;;  %381 = vst [vmem:[#allocation1] ss:$4 sm:$0xff] %v228_v33  ;;  %v264_v41 = vperm.slane %v260_v37, %v1210_v8  ;;  %v272_v42 = vperm.slane %v268_v38, %v1210_v8  ;;  %p1061_p3 = por %p1060_p2, %p1059_p1 }
  0x23   : > { %384 = vst [vmem:[#allocation1 + $0x1] ss:$4 sm:$0xff] %v240_v36  ;;  %v280_v43 = vperm.slane %v276_v39, %v1210_v8  ;;  %v288_v44 = vperm.slane %v284_v40, %v1210_v8  ;;  %v241_v50 = vshrl.u32 %v215_v27, 16  ;;  %v242_v51 = vshrl.u32 %v223_v28, 16 }
  0x24   : > { %v293_v45 = vpack.i.b16 %v272_v42, %v264_v41  ;;  %v231_v52 = vpack.i.b16 %v230_v49, %v229_v48  ;;  %v294_v56 = vshrl.u32 %v264_v41, 16  ;;  %v295_v57 = vshrl.u32 %v272_v42, 16  ;;  %p1062_p5 = pnand %p1061_p3, %p1057_p0 }
  0x25   : > { %v305_v46 = vpack.i.b16 %v288_v44, %v280_v43  ;;  %v243_v53 = vpack.i.b16 %v242_v51, %v241_v50  ;;  %v306_v58 = vshrl.u32 %v280_v43, 16  ;;  %v307_v59 = vshrl.u32 %v288_v44, 16 }
  0x26   : > { %v296_v60 = vpack.i.b16 %v295_v57, %v294_v56  ;;  %v200_v62 = vrot.slane %v199_v20, 4  ;;  %v208_v63 = vrot.slane %v207_v21, 4  ;;  %v216_v1 = vrot.slane %v215_v27, 4 }
  0x27   : > { %v308_v61 = vpack.i.b16 %v307_v59, %v306_v58  ;;  %v224_v2 = vrot.slane %v223_v28, 4  ;;  %v265_v10 = vrot.slane %v264_v41, 4  ;;  %v273_v11 = vrot.slane %v272_v42, 4 }
  0x28   : > { %v201_v3 = vsel %vm194_vm0, 0, %v200_v62  ;;  %v209_v4 = vsel %vm194_vm0, 0, %v208_v63  ;;  %v217_v5 = vsel %vm194_vm0, 0, %v216_v1  ;;  %v281_v13 = vrot.slane %v280_v43, 4 }
  0x29   : > { %v225_v6 = vsel %vm194_vm0, 0, %v224_v2  ;;  %v234_v7 = vpack.i.b16 %v209_v4, %v201_v3  ;;  %v289_v14 = vrot.slane %v288_v44, 4  ;;  %v266_v16 = vsel %vm194_vm0, 0, %v265_v10  ;;  %v943_v10 = vld [vmem:[%s1202_s27 + $0x16] sm:$0x3] }
  0x2a   : > { %v385_v47 = vld.sshfl [vmem:[#allocation1] sm:$0xff pattern:$0x73625140]  ;;  %v246_v9 = vpack.i.b16 %v225_v6, %v217_v5  ;;  %v274_v17 = vsel %vm194_vm0, 0, %v273_v11  ;;  %v282_v18 = vsel %vm194_vm0, 0, %v281_v13  ;;  %v235_v23 = vshrl.u32 %v201_v3, 16 }
  0x2b   : > { %387 = vst [vmem:[#allocation1] ss:$4 sm:$0xff] %v293_v45  ;;  %v290_v19 = vsel %vm194_vm0, 0, %v289_v14  ;;  %v299_v20 = vpack.i.b16 %v274_v17, %v266_v16  ;;  %v236_v24 = vshrl.u32 %v209_v4, 16  ;;  %v247_v25 = vshrl.u32 %v217_v5, 16 }
  0x2c   : > { %390 = vst [vmem:[#allocation1 + $0x1] ss:$4 sm:$0xff] %v305_v46  ;;  %v311_v21 = vpack.i.b16 %v290_v19, %v282_v18  ;;  %v248_v26 = vshrl.u32 %v225_v6, 16  ;;  %v300_v31 = vshrl.u32 %v266_v16, 16  ;;  %v301_v32 = vshrl.u32 %v274_v17, 16 }
  0x2d   : > { %v237_v27 = vpack.i.b16 %v236_v24, %v235_v23  ;;  %v312_v33 = vshrl.u32 %v282_v18, 16  ;;  %v313_v34 = vshrl.u32 %v290_v19, 16  ;;  %v946_v11 = vld [vmem:[%s1202_s27 + $0x28] sm:$0x3]  ;;  %v332_v14 = vrot.slane %v943_v10, 4 }
  0x2e   : > { %v249_v28 = vpack.i.b16 %v248_v26, %v247_v25  ;;  %v302_v35 = vpack.i.b16 %v301_v32, %v300_v31  ;;  %v940_v16 = vld [vmem:[%s1202_s27 + $0x4] sm:$0x3]  ;;  %v941_v17 = vld [vmem:[%s1202_s27 + $0xa] sm:$0x3]  ;;  %v944_v18 = vld [vmem:[%s1202_s27 + $0x1c] sm:$0x3] }
  0x2f   : > { %v314_v36 = vpack.i.b16 %v313_v34, %v312_v33  ;;  %v945_v19 = vld [vmem:[%s1202_s27 + $0x22] sm:$0x3] }
  0x33   : > { %v391_v54 = vld.sshfl [vmem:[#allocation1] sm:$0xff pattern:$0x73625140] }
  0x34   : > { %v395_v55 = vsel %vm392_vm1, %v391_v54, 0  ;;  %411 = vst [vmem:[#allocation1] ss:$4 sm:$0xff] %v231_v52 }
  0x35   : > { %404 = vmatpush.bf16.xpose.msra.mxu0 %v395_v55  ;;  %414 = vst [vmem:[#allocation1 + $0x1] ss:$4 sm:$0xff] %v243_v53 }
  0x3c   : > { %948 = vmatmul.msk.bf16.vlgmr.msra.gmra.mxu0 %vm392_vm1, %v385_v47  ;;  %v415_v0 = vld.sshfl [vmem:[#allocation1] sm:$0xff pattern:$0x73625140] }
  0x3d   : > { %417 = vst [vmem:[#allocation1] ss:$4 sm:$0xff] %v296_v60 }
  0x3e   : > { %420 = vst [vmem:[#allocation1 + $0x1] ss:$4 sm:$0xff] %v308_v61 }
  0x45   : > { %v421_v12 = vld.sshfl [vmem:[#allocation1] sm:$0xff pattern:$0x73625140] }
  0x46   : > { %v424_v15 = vsel %vm392_vm1, %v421_v12, 0  ;;  %440 = vst [vmem:[#allocation1] ss:$4 sm:$0xff] %v234_v7  ;;  %v947_v12 = vld [vmem:[%s1202_s27 + $0x2e] sm:$0x3] }
  0x47   : > { %433 = vmatpush.bf16.xpose.msra.mxu1 %v424_v15  ;;  %443 = vst [vmem:[#allocation1 + $0x1] ss:$4 sm:$0xff] %v246_v9  ;;  %v942_v9 = vld [vmem:[%s1202_s27 + $0x10] sm:$0x3]  ;;  %v340_v15 = vrot.slane %v946_v11, 4  ;;  %v348_v23 = vrot.slane %v947_v12, 4 }
  0x48   : > { %v324_v13 = vrot.slane %v942_v9, 4  ;;  %v1119_v9 = vmov 0.0  }
  0x49   : > { %777 = vst.msk [vmem:[%s1305_s30] sm:$0xff] %vm392_vm1, %v1119_v9 }
  0x4e   : > { %949 = vmatmul.msk.bf16.vlgmr.msra.gmra.mxu1 %vm392_vm1, %v415_v0  ;;  %v444_v22 = vld.sshfl [vmem:[#allocation1] sm:$0xff pattern:$0x73625140] }
  0x4f   : > { %446 = vst [vmem:[#allocation1] ss:$4 sm:$0xff] %v299_v20  ;;  %v325_v20 = vsel %vm194_vm0, %v324_v13, %v940_v16 }
  0x50   : > { %449 = vst [vmem:[#allocation1 + $0x1] ss:$4 sm:$0xff] %v311_v21  ;;  %v333_v21 = vsel %vm194_vm0, %v332_v14, %v941_v17  ;;  %v329_v24 = vperm.slane %v325_v20, %v1210_v8 }
  0x51   : > { %v337_v25 = vperm.slane %v333_v21, %v1210_v8 }
  0x52   : > { %v359_v33 = vshrl.u32 %v329_v24, 16 }
  0x53   : > { %v360_v34 = vshrl.u32 %v337_v25, 16 }
  0x57   : > { %v450_v29 = vld.sshfl [vmem:[#allocation1] sm:$0xff pattern:$0x73625140] }
  0x58   : > { %v453_v30 = vsel %vm392_vm1, %v450_v29, 0  ;;  %469 = vst [vmem:[#allocation1] ss:$4 sm:$0xff] %v237_v27  ;;  %v349_v27 = vsel %vm194_vm0, %v348_v23, %v945_v19  ;;  %v358_v29 = vpack.i.b16 %v337_v25, %v329_v24 }
  0x59   : > { %462 = vmatpush.bf16.xpose.msra.mxu2 %v453_v30  ;;  %472 = vst [vmem:[#allocation1 + $0x1] ss:$4 sm:$0xff] %v249_v28  ;;  %v353_v28 = vperm.slane %v349_v27, %v1210_v8 }
  0x60   : > { %950 = vmatmul.msk.bf16.vlgmr.msra.gmra.mxu2 %vm392_vm1, %v444_v22  ;;  %v473_v37 = vld.sshfl [vmem:[#allocation1] sm:$0xff pattern:$0x73625140]  ;;  %v341_v22 = vsel %vm194_vm0, %v340_v15, %v944_v18 }
  0x61   : > { %475 = vst [vmem:[#allocation1] ss:$4 sm:$0xff] %v302_v35  ;;  %v345_v26 = vperm.slane %v341_v22, %v1210_v8  ;;  %v778_v22 = vld [vmem:[%s1305_s30] sm:$0xff] }
  0x62   : > { %478 = vst [vmem:[#allocation1 + $0x1] ss:$4 sm:$0xff] %v314_v36  ;;  %v372_v36 = vshrl.u32 %v353_v28, 16 }
  0x63   : > { %v370_v30 = vpack.i.b16 %v353_v28, %v345_v26  ;;  %v371_v35 = vshrl.u32 %v345_v26, 16 }
  0x69   : > { %v479_v38 = vld.sshfl [vmem:[#allocation1] sm:$0xff pattern:$0x73625140] }
  0x6a   : > { %v482_v39 = vsel %vm392_vm1, %v479_v38, 0  ;;  %546 = vst [vmem:[#allocation1] ss:$4 sm:$0xff] %v358_v29  ;;  %v373_v38 = vpack.i.b16 %v372_v36, %v371_v35 }
  0x6b   : > { %491 = vmatpush.bf16.xpose.msra.mxu3 %v482_v39  ;;  %549 = vst [vmem:[#allocation1 + $0x1] ss:$4 sm:$0xff] %v370_v30 }
  0x72   : > { %951 = vmatmul.msk.bf16.vlgmr.msra.gmra.mxu3 %vm392_vm1, %v473_v37  ;;  %v550_v31 = vld.sshfl [vmem:[#allocation1] sm:$0xff pattern:$0x73625140]  ;;  %v361_v37 = vpack.i.b16 %v360_v34, %v359_v33 }
  0x73   : > { %v555_v32 = vsel %vm554_vm2, %v550_v31, 0  ;;  %574 = vst [vmem:[#allocation1 + $0x1] ss:$4 sm:$0xff] %v373_v38  ;;  %v1120_v31 = vmov 1983009808  }
  0x74   : > { %564 = vmatpush.bf16.msrb.mxu0 %v555_v32  ;;  %571 = vst [vmem:[#allocation1] ss:$4 sm:$0xff] %v361_v37  ;;  %v648_v32 = vunpack.c.l.s4 %v1120_v31 }
  0x76   : > { %v649_v36 = vunpack.c.0.s8 %v648_v32 }
  0x7b   : > { %v575_v39 = vld.sshfl [vmem:[#allocation1] sm:$0xff pattern:$0x73625140] }
  0xb9   : > { %v406_v40 = vpop.f32.mrf.mxu0 }
  0xba   : > { %v497_v41 = vsel %vm392_vm1, %v406_v40, -inf }
  0xbb   : > { %498 = vmax.xlane.f32.xlu1 %v497_v41 }
  0xc1   : > { %v408_v42 = vpop.f32.mrf.mxu0 }
  0xc2   : > { %v330_v42 = vrot.slane %v329_v24, 4 }
  0xcb   : > { %v435_v43 = vpop.f32.mrf.mxu1 }
  0xcc   : > { %v500_v44 = vsel %vm392_vm1, %v435_v43, -inf }
  0xcd   : > { %501 = vmax.xlane.f32.xlu1 %v500_v44  ;;  %v346_v44 = vrot.slane %v345_v26, 4 }
  0xd3   : > { %v437_v45 = vpop.f32.mrf.mxu1 }
  0xd4   : > { %v354_v45 = vrot.slane %v353_v28, 4 }
  0xe3   : > { %v464_v46 = vpop.f32.mrf.mxu2 }
  0xe4   : > { %v503_v47 = vsel %vm392_vm1, %v464_v46, -inf }
  0xe5   : > { %504 = vmax.xlane.f32.xlu0 %v503_v47  ;;  %v331_v47 = vsel %vm194_vm0, 0, %v330_v42 }
  0xeb   : > { %v466_v48 = vpop.f32.mrf.mxu2 }
  0xf5   : > { %v493_v49 = vpop.f32.mrf.mxu3 }
  0xf6   : > { %v506_v50 = vsel %vm392_vm1, %v493_v49, -inf }
  0xf7   : > { %507 = vmax.xlane.f32.xlu0 %v506_v50  ;;  %v355_v50 = vsel %vm194_vm0, 0, %v354_v45 }
  0xfd   : > { %v495_v51 = vpop.f32.mrf.mxu3 }
 0x12e   : > { %v499_v52 = vpop.xlane.xlu1 %498 }
 0x12f   : > { %v509_v53 = vsub.f32 %v406_v40, %v499_v52  ;;  %v579_v40 = vsel %vm554_vm2, %v575_v39, 0 }
 0x130   : > { %588 = vmatpush.bf16.msrb.mxu1 %v579_v40 }
 0x131   : > { %v513_v54 = vmul.f32 1.442695, %v509_v53 }
 0x133   : > { %1022 = vpow2.f32 %v513_v54 }
 0x139   : > { %v1258_v55 = vpop.eup %1022 }
 0x13a   : > { %v521_v56 = vsel %vm392_vm1, %v1258_v55, 0.0 }
 0x13b   : > { %522 = vadd.xlane.f32.xlu0 %v521_v56  ;;  %v365_v56 = vshrl.u32 %v331_v47, 16 }
 0x140   : > { %v502_v57 = vpop.xlane.xlu1 %501 }
 0x141   : > { %v510_v58 = vsub.f32 %v435_v43, %v502_v57  ;;  %v338_v43 = vrot.slane %v337_v25, 4 }
 0x143   : > { %v515_v59 = vmul.f32 1.442695, %v510_v58  ;;  %v339_v48 = vsel %vm194_vm0, 0, %v338_v43 }
 0x144   : > { %v364_v53 = vpack.i.b16 %v339_v48, %v331_v47  ;;  %v366_v57 = vshrl.u32 %v339_v48, 16 }
 0x145   : > { %1024 = vpow2.f32 %v515_v59  ;;  %v378_v59 = vshrl.u32 %v355_v50, 16 }
 0x146   : > { %595 = vst [vmem:[#allocation1] ss:$4 sm:$0xff] %v364_v53 }
 0x14b   : > { %v1262_v60 = vpop.eup %1024 }
 0x14c   : > { %v524_v61 = vsel %vm392_vm1, %v1262_v60, 0.0 }
 0x14d   : > { %525 = vadd.xlane.f32.xlu1 %v524_v61  ;;  %v367_v61 = vpack.i.b16 %v366_v57, %v365_v56 }
 0x158   : > { %v505_v62 = vpop.xlane.xlu0 %504 }
 0x159   : > { %v511_v63 = vsub.f32 %v464_v46, %v505_v62 }
 0x15b   : > { %v517_v0 = vmul.f32 1.442695, %v511_v63 }
 0x15d   : > { %1026 = vpow2.f32 %v517_v0 }
 0x163   : > { %v1266_v1 = vpop.eup %1026 }
 0x164   : > { %v527_v2 = vsel %vm392_vm1, %v1266_v1, 0.0 }
 0x165   : > { %528 = vadd.xlane.f32.xlu2 %v527_v2 }
 0x16a   : > { %v508_v3 = vpop.xlane.xlu0 %507 }
 0x16b   : > { %v512_v4 = vsub.f32 %v493_v49, %v508_v3  ;;  %v347_v49 = vsel %vm194_vm0, 0, %v346_v44 }
 0x16c   : > { %v376_v54 = vpack.i.b16 %v355_v50, %v347_v49  ;;  %v377_v58 = vshrl.u32 %v347_v49, 16 }
 0x16d   : > { %v519_v5 = vmul.f32 1.442695, %v512_v4 }
 0x16e   : > { %598 = vst [vmem:[#allocation1 + $0x1] ss:$4 sm:$0xff] %v376_v54  ;;  %v379_v62 = vpack.i.b16 %v378_v59, %v377_v58 }
 0x16f   : > { %1028 = vpow2.f32 %v519_v5 }
 0x175   : > { %v1270_v6 = vpop.eup %1028  ;;  %v599_v0 = vld.sshfl [vmem:[#allocation1] sm:$0xff pattern:$0x73625140] }
 0x176   : > { %v530_v7 = vsel %vm392_vm1, %v1270_v6, 0.0  ;;  %619 = vst [vmem:[#allocation1] ss:$4 sm:$0xff] %v367_v61 }
 0x177   : > { %531 = vadd.xlane.f32.xlu2 %v530_v7  ;;  %622 = vst [vmem:[#allocation1 + $0x1] ss:$4 sm:$0xff] %v379_v62 }
 0x17e   : > { %v623_v5 = vld.sshfl [vmem:[#allocation1] sm:$0xff pattern:$0x73625140] }
 0x17f   : > { %v627_v7 = vsel %vm554_vm2, %v623_v5, 0 }
 0x180   : > { %636 = vmatpush.bf16.msrb.mxu3 %v627_v7 }
 0x1ae   : > { %v523_v41 = vpop.xlane.xlu0 %522 }
 0x1af   : > { %1030 = vrcp.f32 %v523_v41 }
 0x1b5   : > { %v1031_v46 = vpop.eup %1030 }
 0x1b6   : > { %v537_v51 = vmul.f32 %v1031_v46, %v1258_v55  ;;  %v603_v55 = vsel %vm554_vm2, %v599_v0, 0 }
 0x1b7   : > { %612 = vmatpush.bf16.msrb.mxu2 %v603_v55 }
 0x1b8   : > { %v541_v52 = vpack.c.bf16 %v537_v51, %v537_v51  ;;  %v779_v15 = vsel %vm392_vm1, %v537_v51, 0.0 }
 0x1ba   : > { %952 = vmatmul.msk.bf16.vlgmr.msrb.gmra.mxu0 %vm392_vm1, %v541_v52 }
 0x1c0   : > { %v526_v63 = vpop.xlane.xlu1 %525 }
 0x1c1   : > { %1032 = vrcp.f32 %v526_v63 }
 0x1c7   : > { %v1033_v2 = vpop.eup %1032 }
 0x1c8   : > { %v538_v3 = vmul.f32 %v1033_v2, %v1262_v60 }
 0x1ca   : > { %v542_v4 = vpack.c.bf16 %v538_v3, %v538_v3  ;;  %v780_v14 = vsel %vm392_vm1, %v538_v3, 0.0 }
 0x1cb   : > { %v781_v18 = vadd.f32 %v780_v14, %v779_v15 }
 0x1cc   : > { %953 = vmatmul.msk.bf16.vlgmr.msrb.gmra.mxu1 %vm392_vm1, %v542_v4 }
 0x1d8   : > { %v529_v10 = vpop.xlane.xlu2 %528 }
 0x1d9   : > { %1034 = vrcp.f32 %v529_v10 }
 0x1df   : > { %v1035_v11 = vpop.eup %1034 }
 0x1e0   : > { %v539_v60 = vmul.f32 %v1035_v11, %v1266_v1 }
 0x1e2   : > { %v543_v12 = vpack.c.bf16 %v539_v60, %v539_v60  ;;  %v782_v16 = vsel %vm392_vm1, %v539_v60, 0.0 }
 0x1e3   : > { %v783_v20 = vadd.f32 %v782_v16, %v781_v18 }
 0x1e4   : > { %954 = vmatmul.msk.bf16.vlgmr.msrb.gmra.mxu2 %vm392_vm1, %v543_v12 }
 0x1ea   : > { %v532_v13 = vpop.xlane.xlu2 %531 }
 0x1eb   : > { %1036 = vrcp.f32 %v532_v13 }
 0x1f1   : > { %v1037_v17 = vpop.eup %1036 }
 0x1f2   : > { %v540_v19 = vmul.f32 %v1037_v17, %v1270_v6 }
 0x1f4   : > { %v784_v1 = vsel %vm392_vm1, %v540_v19, 0.0  ;;  %v544_v21 = vpack.c.bf16 %v540_v19, %v540_v19 }
 0x1f5   : > { %v785_v23 = vadd.f32 %v784_v1, %v783_v20 }
 0x1f6   : > { %955 = vmatmul.msk.bf16.vlgmr.msrb.gmra.mxu3 %vm392_vm1, %v544_v21 }
 0x1f7   : > { %v786_v24 = vadd.f32 %v785_v23, %v778_v22 }
 0x1f9   : > { %787 = vst.msk [vmem:[%s1305_s30] sm:$0xff] %vm392_vm1, %v786_v24 }
 0x200   : > { %v791_v25 = vld [vmem:[%s1305_s30] sm:$0xff] }
 0x201   : > { %v792_v26 = vmul.f32 0.25, %v791_v25 }
 0x203   : > { %793 = vst.msk [vmem:[%s1305_s30] sm:$0xff] %vm392_vm1, %v792_v26 }
 0x237   : > { %v566_v27 = vpop.f32.mrf.mxu0 }
 0x238   : > { %v645_v34 = vrot.slane %v566_v27, 4 }
 0x23f   : > { %v568_v28 = vpop.f32.mrf.mxu0 }
 0x249   : > { %v590_v29 = vpop.f32.mrf.mxu1 }
 0x24a   : > { %v657_v40 = vrot.slane %v590_v29, 4 }
 0x251   : > { %v592_v30 = vpop.f32.mrf.mxu1 }
 0x267   : > { %v614_v6 = vpop.f32.mrf.mxu2 }
 0x268   : > { %v642_v35 = vrot.slane %v614_v6, 4  ;;  %v646_v37 = vsel %vm194_vm0, %v614_v6, %v645_v34 }
 0x269   : > { %v654_v39 = vperm.slane %v646_v37, %v649_v36 }
 0x26a   : > { %v644_v38 = vsel %vm194_vm0, %v642_v35, %v566_v27 }
 0x26b   : > { %v650_v41 = vperm.slane %v644_v38, %v649_v36  ;;  %v681_v45 = vrot.slane %v654_v39, 4 }
 0x26d   : > { %v669_v48 = vrot.slane %v650_v41, 4 }
 0x26f   : > { %v616_v33 = vpop.f32.mrf.mxu2 }
 0x279   : > { %v638_v42 = vpop.f32.mrf.mxu3 }
 0x27a   : > { %v655_v43 = vrot.slane %v638_v42, 4  ;;  %v658_v44 = vsel %vm194_vm0, %v638_v42, %v657_v40 }
 0x27b   : > { %v666_v46 = vperm.slane %v658_v44, %v649_v36 }
 0x27c   : > { %v656_v47 = vsel %vm194_vm0, %v655_v43, %v590_v29 }
 0x27d   : > { %v662_v49 = vperm.slane %v656_v47, %v649_v36  ;;  %v679_v50 = vrot.slane %v666_v46, 4  ;;  %v682_v51 = vsel %vm194_vm0, %v666_v46, %v681_v45 }
 0x27e   : > { %v690_v52 = vperm.slane %v682_v51, %v1210_v8 }
 0x27f   : > { %v667_v53 = vrot.slane %v662_v49, 4  ;;  %v670_v54 = vsel %vm194_vm0, %v662_v49, %v669_v48  ;;  %v680_v56 = vsel %vm194_vm0, %v679_v50, %v654_v39 }
 0x280   : > { %v678_v57 = vperm.slane %v670_v54, %v1210_v8  ;;  %v686_v58 = vperm.slane %v680_v56, %v1210_v8  ;;  %v697_v59 = vrot.slane %v690_v52, 4 }
 0x281   : > { %v668_v61 = vsel %vm194_vm0, %v667_v53, %v650_v41  ;;  %v640_v62 = vpop.f32.mrf.mxu3 }
 0x282   : > { %v674_v63 = vperm.slane %v668_v61, %v1210_v8  ;;  %v693_v0 = vrot.slane %v678_v57, 4  ;;  %v695_v55 = vrot.slane %v686_v58, 4  ;;  %v698_v2 = vsel %vm194_vm0, 0.0, %v697_v59 }
 0x283   : > { %v710_v3 = vsel %vm194_vm0, %v697_v59, %v686_v58  ;;  %v715_v4 = vrot.slane %v698_v2, 4 }
 0x284   : > { %v691_v5 = vrot.slane %v674_v63, 4  ;;  %v694_v7 = vsel %vm194_vm0, 0.0, %v693_v0  ;;  %v696_v9 = vsel %vm194_vm0, 0.0, %v695_v55  ;;  %v714_v10 = vperm.slane %v710_v3, %v649_v36 }
 0x285   : > { %v704_v11 = vrot.slane %v694_v7, 4  ;;  %v699_v60 = vsel %vm194_vm0, %v693_v0, %v674_v63  ;;  %v716_v12 = vsel %vm194_vm0, %v715_v4, %v696_v9 }
 0x286   : > { %v692_v13 = vsel %vm194_vm0, 0.0, %v691_v5  ;;  %v703_v14 = vperm.slane %v699_v60, %v649_v36  ;;  %v720_v15 = vperm.slane %v716_v12, %v649_v36  ;;  %v735_v16 = vrot.slane %v714_v10, 4 }
 0x287   : > { %v705_v17 = vsel %vm194_vm0, %v704_v11, %v692_v13 }
 0x288   : > { %v709_v18 = vperm.slane %v705_v17, %v649_v36  ;;  %v723_v19 = vrot.slane %v703_v14, 4  ;;  %v736_v20 = vsel %vm194_vm0, %v720_v15, %v735_v16  ;;  %v733_v1 = vrot.slane %v720_v15, 4 }
 0x289   : > { %1065 = shalt.err (!%p1062_p5)
}
 0x28a   : > { %961 = dma.vmem_to_hbm [thread:$0]  (%p1179_p4), %s818_s7, 128, %s820_s8, %s802_s12   ;;  %v744_v21 = vperm.slane %v736_v20, %v1210_v8  ;;  %v724_v22 = vsel %vm194_vm0, %v709_v18, %v723_v19  ;;  %v721_v23 = vrot.slane %v709_v18, 4  ;;  %v734_v24 = vsel %vm194_vm0, %v733_v1, %v714_v10 }
 0x28b   : > { %v732_v25 = vperm.slane %v724_v22, %v1210_v8  ;;  %v740_v27 = vperm.slane %v734_v24, %v1210_v8  ;;  %s1121_s19 = smov 16   ;;  %s1122_s27 = smov 24   ;;  %vm766_vm3 = vcmask 130048   ;;  %vm768_vm4 = vcmask 195584  }
 0x28c   : > { %v749_v26 = vrot.slane %v744_v21, 4  ;;  %v722_v28 = vsel %vm194_vm0, %v721_v23, %v703_v14  ;;  %s1123_s28 = smov 8   ;;  %s931_s29 = sshll.u32 %s1196_s23, 2  ;;  %vm771_vm5 = vcmask 257024  }
 0x28d   : > { %v751_v30 = vrot.slane %v732_v25, 4  ;;  %v728_v6 = vperm.slane %v722_v28, %v1210_v8  ;;  %v745_v31 = vrot.slane %v740_v27, 4  ;;  %s183_s4 = scalar_lea.vmem %s1400_s1, %s931_s29 }
 0x28e   : > { %v750_v29 = vsel %vm194_vm0, %v749_v26, %v732_v25 }
 0x28f   : > { %758 = vrot.lane.b32.xlu0 %v750_v29, %s1121_s19  ;;  %v752_v32 = vsel %vm194_vm0, %v744_v21, %v751_v30  ;;  %v747_v33 = vrot.slane %v728_v6, 4  ;;  %v746_v34 = vsel %vm194_vm0, %v745_v31, %v728_v6 }
 0x290   : > { %762 = vrot.lane.b32.xlu1 %v752_v32, %s1122_s27 }
 0x291   : > { %v748_v35 = vsel %vm194_vm0, %v740_v27, %v747_v33 }
 0x292   : > { %754 = vrot.lane.b32.xlu2 %v748_v35, %s1123_s28 }
 0x2ec   : > { %v755_v36 = vpop.permute.xlu2 %754 }
 0x2ed   : > { %v765_v37 = vsel %vm392_vm1, %v746_v34, %v755_v36 }
 0x301   : > { %v759_v8 = vpop.permute.xlu0 %758 }
 0x302   : > { %v767_v38 = vsel %vm766_vm3, %v765_v37, %v759_v8  ;;  %v763_v39 = vpop.permute.xlu1 %762 }
 0x303   : > { %v769_v40 = vsel %vm768_vm4, %v767_v38, %v763_v39 }
 0x304   : > { %v770_v41 = vpack.c.bf16 %v769_v40, %v769_v40 }
 0x306   : > { %772 = vst.msk [vmem:[%s183_s4] sm:$0xf] %vm771_vm5, %v770_v41 }
 0x307 PF: > { %p967_p4 = scmp.ge.s32.totalorder %s1116_s14, 2  ;;  %s841_s5 = sand.u32 1, %s1096_s9  }
 0x308   : > { %s842_s23 = scalar_lea.sflag [#allocation3], %s841_s5 }
 0x309   : > { %p964_p6 = pnand %p967_p4, %p1186_p8 }
 0x30b   : > { %p965_p7 = pneg %p964_p6 }
 0x30d   : > { %1091 = dma.done.wait (%p965_p7), %s842_s23, 128  }
 0x30e   : > { %1093 = vsyncadd (%p965_p7), %s842_s23, 4294967168  ;;  %s16_s14 = sadd.s32 1, %s1116_s14   ;;  %s1404_s9 = smov %s1100_s10 }
 0x30f   : > { %p13_p9 = scmp.ge.s32.totalorder %s16_s14, 4   ;;  %s1405_s10 = smov %s1104_s11 }
 0x310   : > { %s1406_s11 = smov %s1192_s22  ;;  %s1407_s12 = smov %s1112_s13 }
 0x311   : > { %s1408_s13 = smov %s1410_s17  ;;  %15 = sbr.rel (!%p13_p9) target bundleno = 4 (0x4), region = 93 }
 0x316   :  { %848 = vsyncpa [#allocation3], 1 }
 0x317   :  { %850 = vsyncpa [#allocation3 + $0x1], 1 }

</bundles_post_ra>
